<compile_context>
chip_gen: v6e
topology: v6e:2x2x1
jax: 0.10.0
libtpu: 0.0.40
codegen_flags: <defaults>
</compile_context>

<pallas_src>
import functools

import jax
import jax.numpy as jnp
from jax import lax
from jax.experimental import pallas as pl
from jax.experimental.pallas import tpu as pltpu

VOCAB = 32000
EMB_DIM = 4096


def _round_up(x, m):
    return (x + m - 1) // m * m


def _emb_gather_kernel(tok_block, last_valid, ids_ref, table_hbm, out_ref, sem):
    """Gather embedding rows straight into the pipelined output VMEM tile.

    ids_ref   : SMEM, (n_tok,) int32 token ids (scalar prefetch).
    table_hbm : HBM ref, (VOCAB, EMB_DIM) embedding table (memory_space=ANY).
    out_ref   : VMEM, (tok_block, EMB_DIM) output tile for this grid step.
    sem       : (1,) DMA semaphore; every row copy signals it, one bulk wait.
    """
    base = pl.program_id(0) * tok_block

    def gather(nrows):
        # Issue all row-gather DMAs first: HBM table row -> output VMEM row.
        # NOTE: token ids are assumed in-range (0 <= id < VOCAB), matching
        # torch.nn.Embedding's contract; OOB ids hit the DMA bounds check.
        def _issue(r, carry):
            tok = ids_ref[base + r]
            pltpu.make_async_copy(
                table_hbm.at[tok], out_ref.at[r], sem.at[0]
            ).start()
            return carry

        lax.fori_loop(0, nrows, _issue, 0, unroll=16)

        # Single bulk wait sized to all `nrows` row copies.  Every row DMA is
        # the same size, so one descriptor covering nrows rows consumes
        # exactly the increments issued above (source index is irrelevant for
        # the wait; only the transfer size matters).
        pltpu.make_async_copy(
            table_hbm.at[pl.ds(0, nrows)],
            out_ref.at[pl.ds(0, nrows)],
            sem.at[0],
        ).wait()

    if last_valid == tok_block:
        # Every grid step is full -- no branching needed.
        gather(tok_block)
    else:
        is_last = pl.program_id(0) == pl.num_programs(0) - 1

        @pl.when(jnp.logical_not(is_last))
        def _():
            gather(tok_block)

        @pl.when(is_last)
        def _():
            # Tail block: only gather the valid rows (skips wasted HBM reads);
            # the trailing padded output rows are sliced off by the wrapper.
            gather(last_valid)


def embedding_lookup(x, table, tok_block=256):
    """Pallas equivalent of torch.nn.Embedding(table)(x).

    x      : integer token ids, arbitrary shape.
    table  : (vocab, emb_dim) embedding table.  f32 matches torch's default;
             pass a bf16 table to halve HBM bytes per lookup (biggest lever on
             v5e) since this op is purely HBM-bandwidth bound.
    Returns x.shape + (emb_dim,) array of table.dtype.
    """
    orig_shape = x.shape
    ids_flat = x.reshape(-1).astype(jnp.int32)
    n_tok = int(ids_flat.shape[0])
    emb_dim = table.shape[1]

    # Tokens per grid step: a multiple of 8 so the (tok, emb_dim) f32 output
    # tile is built from full (8,128) vregs.  256 rows f32 -> 4 MiB tile,
    # 8 MiB double-buffered: inside the scoped-VMEM default on v5e/v6e/v7x.
    tok_block = max(8, (tok_block // 8) * 8)
    tok = min(tok_block, _round_up(n_tok, 8))
    n_blocks = (n_tok + tok - 1) // tok
    n_pad = n_blocks * tok
    last_valid = n_tok - (n_blocks - 1) * tok  # rows gathered on final block

    # TODO(synk): for very long prefill (n_tok >> 100K) the scalar-prefetched
    # id array can exceed SMEM; chunk the call at the wrapper level.

    out = pl.pallas_call(
        functools.partial(_emb_gather_kernel, tok, last_valid),
        out_shape=jax.ShapeDtypeStruct((n_pad, emb_dim), table.dtype),
        grid_spec=pltpu.PrefetchScalarGridSpec(
            num_scalar_prefetch=1,
            grid=(n_blocks,),
            in_specs=[
                # Embedding table stays in HBM; rows are gathered manually.
                pl.BlockSpec(memory_space=pl.ANY),
            ],
            out_specs=pl.BlockSpec((tok, emb_dim), lambda i, ids: (i, 0)),
            scratch_shapes=[pltpu.SemaphoreType.DMA((1,))],
        ),
        compiler_params=pltpu.CompilerParams(
            # Token blocks are independent -> shard across v7x's 2 TensorCores.
            dimension_semantics=("parallel",),
        ),
    )(ids_flat, table)

    if n_pad != n_tok:
        # Only slice when padding actually occurred (avoids an extra HBM
        # round-trip on the common unpadded path).
        out = out[:n_tok]
    return out.reshape(orig_shape + (emb_dim,))


if __name__ == "__main__":
    key = jax.random.PRNGKey(0)
    k_tab, k_ids = jax.random.split(key)

    # Deterministic synthetic embedding table with the module's true shape
    # (f32 to match torch.nn.Embedding's default parameter dtype).
    table = jax.random.normal(k_tab, (VOCAB, EMB_DIM), dtype=jnp.float32)

    # Small token-id input, e.g. (batch=2, seq=8).
    x = jax.random.randint(k_ids, (2, 8), minval=0, maxval=VOCAB, dtype=jnp.int32)

    y = embedding_lookup(x, table)
    y = jax.block_until_ready(y)

    # Reference check against a plain JAX gather.
    y_ref = jnp.take(table, x.reshape(-1), axis=0).reshape(x.shape + (EMB_DIM,))
    assert y.shape == (2, 8, EMB_DIM)
    assert y.dtype == jnp.float32
    assert bool(jnp.allclose(y, y_ref))

    print("KERNEL_OK")
</pallas_src>

<mosaic_0001>
module attributes {stable_mosaic.version = 11 : i64} {
  func.func @_emb_gather_kernel(%arg0: i32, %arg1: memref<16xi32, #tpu.memory_space<smem>>, %arg2: memref<32000x4096xf32, #tpu.memory_space<any>>, %arg3: memref<16x4096xf32, #tpu.memory_space<vmem>>, %arg4: memref<1x!tpu.dma_semaphore, #tpu.memory_space<semaphore_mem>>) attributes {dimension_semantics = [#tpu.dimension_semantics<parallel>], iteration_bounds = array<i64: 1>, scalar_prefetch = 1 : i64, scratch_operands = 1 : i64, tpu.core_type = #tpu.core_type<tc>, window_params = [{}, {transform_indices = @transform_1, window_bounds = array<i64: 16, 4096>}]} {
    %c16_i32 = arith.constant 16 : i32
    %0 = arith.muli %arg0, %c16_i32 : i32
    %c0_i32 = arith.constant 0 : i32
    %1 = arith.addi %0, %c0_i32 : i32
    %2 = arith.index_cast %1 : i32 to index
    %3 = memref.load %arg1[%2] : memref<16xi32, #tpu.memory_space<smem>>
    %c0_i32_0 = arith.constant 0 : i32
    %c0_i32_1 = arith.constant 0 : i32
    %4 = tpu.memref_slice %arg2[%3, %c0_i32_1] : memref<32000x4096xf32, #tpu.memory_space<any>> -> memref<1x4096xf32, #tpu.memory_space<any>>
    %5 = tpu.memref_squeeze %4 : memref<1x4096xf32, #tpu.memory_space<any>> -> memref<4096xf32, #tpu.memory_space<any>>
    %c0_i32_2 = arith.constant 0 : i32
    %6 = tpu.memref_slice %arg3[%c0_i32, %c0_i32_2] : memref<16x4096xf32, #tpu.memory_space<vmem>> -> memref<1x4096xf32, #tpu.memory_space<vmem>>
    %7 = tpu.memref_squeeze %6 : memref<1x4096xf32, #tpu.memory_space<vmem>> -> memref<4096xf32, #tpu.memory_space<vmem>>
    %8 = tpu.memref_slice %arg4[%c0_i32_0] : memref<1x!tpu.dma_semaphore, #tpu.memory_space<semaphore_mem>> -> memref<1x!tpu.dma_semaphore, #tpu.memory_space<semaphore_mem>>
    %9 = tpu.memref_squeeze %8 : memref<1x!tpu.dma_semaphore, #tpu.memory_space<semaphore_mem>> -> memref<!tpu.dma_semaphore, #tpu.memory_space<semaphore_mem>>
    tpu.enqueue_dma source(%5 : memref<4096xf32, #tpu.memory_space<any>>) target(%7 : memref<4096xf32, #tpu.memory_space<vmem>>) target_semaphore(%9 : memref<!tpu.dma_semaphore, #tpu.memory_space<semaphore_mem>>)
    %c1_i32 = arith.constant 1 : i32
    %10 = arith.addi %0, %c1_i32 : i32
    %11 = arith.index_cast %10 : i32 to index
    %12 = memref.load %arg1[%11] : memref<16xi32, #tpu.memory_space<smem>>
    %c0_i32_3 = arith.constant 0 : i32
    %c0_i32_4 = arith.constant 0 : i32
    %13 = tpu.memref_slice %arg2[%12, %c0_i32_4] : memref<32000x4096xf32, #tpu.memory_space<any>> -> memref<1x4096xf32, #tpu.memory_space<any>>
    %14 = tpu.memref_squeeze %13 : memref<1x4096xf32, #tpu.memory_space<any>> -> memref<4096xf32, #tpu.memory_space<any>>
    %c0_i32_5 = arith.constant 0 : i32
    %15 = tpu.memref_slice %arg3[%c1_i32, %c0_i32_5] : memref<16x4096xf32, #tpu.memory_space<vmem>> -> memref<1x4096xf32, #tpu.memory_space<vmem>>
    %16 = tpu.memref_squeeze %15 : memref<1x4096xf32, #tpu.memory_space<vmem>> -> memref<4096xf32, #tpu.memory_space<vmem>>
    %17 = tpu.memref_slice %arg4[%c0_i32_3] : memref<1x!tpu.dma_semaphore, #tpu.memory_space<semaphore_mem>> -> memref<1x!tpu.dma_semaphore, #tpu.memory_space<semaphore_mem>>
    %18 = tpu.memref_squeeze %17 : memref<1x!tpu.dma_semaphore, #tpu.memory_space<semaphore_mem>> -> memref<!tpu.dma_semaphore, #tpu.memory_space<semaphore_mem>>
    tpu.enqueue_dma source(%14 : memref<4096xf32, #tpu.memory_space<any>>) target(%16 : memref<4096xf32, #tpu.memory_space<vmem>>) target_semaphore(%18 : memref<!tpu.dma_semaphore, #tpu.memory_space<semaphore_mem>>)
    %c2_i32 = arith.constant 2 : i32
    %19 = arith.addi %0, %c2_i32 : i32
    %20 = arith.index_cast %19 : i32 to index
    %21 = memref.load %arg1[%20] : memref<16xi32, #tpu.memory_space<smem>>
    %c0_i32_6 = arith.constant 0 : i32
    %c0_i32_7 = arith.constant 0 : i32
    %22 = tpu.memref_slice %arg2[%21, %c0_i32_7] : memref<32000x4096xf32, #tpu.memory_space<any>> -> memref<1x4096xf32, #tpu.memory_space<any>>
    %23 = tpu.memref_squeeze %22 : memref<1x4096xf32, #tpu.memory_space<any>> -> memref<4096xf32, #tpu.memory_space<any>>
    %c0_i32_8 = arith.constant 0 : i32
    %24 = tpu.memref_slice %arg3[%c2_i32, %c0_i32_8] : memref<16x4096xf32, #tpu.memory_space<vmem>> -> memref<1x4096xf32, #tpu.memory_space<vmem>>
    %25 = tpu.memref_squeeze %24 : memref<1x4096xf32, #tpu.memory_space<vmem>> -> memref<4096xf32, #tpu.memory_space<vmem>>
    %26 = tpu.memref_slice %arg4[%c0_i32_6] : memref<1x!tpu.dma_semaphore, #tpu.memory_space<semaphore_mem>> -> memref<1x!tpu.dma_semaphore, #tpu.memory_space<semaphore_mem>>
    %27 = tpu.memref_squeeze %26 : memref<1x!tpu.dma_semaphore, #tpu.memory_space<semaphore_mem>> -> memref<!tpu.dma_semaphore, #tpu.memory_space<semaphore_mem>>
    tpu.enqueue_dma source(%23 : memref<4096xf32, #tpu.memory_space<any>>) target(%25 : memref<4096xf32, #tpu.memory_space<vmem>>) target_semaphore(%27 : memref<!tpu.dma_semaphore, #tpu.memory_space<semaphore_mem>>)
    %c3_i32 = arith.constant 3 : i32
    %28 = arith.addi %0, %c3_i32 : i32
    %29 = arith.index_cast %28 : i32 to index
    %30 = memref.load %arg1[%29] : memref<16xi32, #tpu.memory_space<smem>>
    %c0_i32_9 = arith.constant 0 : i32
    %c0_i32_10 = arith.constant 0 : i32
    %31 = tpu.memref_slice %arg2[%30, %c0_i32_10] : memref<32000x4096xf32, #tpu.memory_space<any>> -> memref<1x4096xf32, #tpu.memory_space<any>>
    %32 = tpu.memref_squeeze %31 : memref<1x4096xf32, #tpu.memory_space<any>> -> memref<4096xf32, #tpu.memory_space<any>>
    %c0_i32_11 = arith.constant 0 : i32
    %33 = tpu.memref_slice %arg3[%c3_i32, %c0_i32_11] : memref<16x4096xf32, #tpu.memory_space<vmem>> -> memref<1x4096xf32, #tpu.memory_space<vmem>>
    %34 = tpu.memref_squeeze %33 : memref<1x4096xf32, #tpu.memory_space<vmem>> -> memref<4096xf32, #tpu.memory_space<vmem>>
    %35 = tpu.memref_slice %arg4[%c0_i32_9] : memref<1x!tpu.dma_semaphore, #tpu.memory_space<semaphore_mem>> -> memref<1x!tpu.dma_semaphore, #tpu.memory_space<semaphore_mem>>
    %36 = tpu.memref_squeeze %35 : memref<1x!tpu.dma_semaphore, #tpu.memory_space<semaphore_mem>> -> memref<!tpu.dma_semaphore, #tpu.memory_space<semaphore_mem>>
    tpu.enqueue_dma source(%32 : memref<4096xf32, #tpu.memory_space<any>>) target(%34 : memref<4096xf32, #tpu.memory_space<vmem>>) target_semaphore(%36 : memref<!tpu.dma_semaphore, #tpu.memory_space<semaphore_mem>>)
    %c4_i32 = arith.constant 4 : i32
    %37 = arith.addi %0, %c4_i32 : i32
    %38 = arith.index_cast %37 : i32 to index
    %39 = memref.load %arg1[%38] : memref<16xi32, #tpu.memory_space<smem>>
    %c0_i32_12 = arith.constant 0 : i32
    %c0_i32_13 = arith.constant 0 : i32
    %40 = tpu.memref_slice %arg2[%39, %c0_i32_13] : memref<32000x4096xf32, #tpu.memory_space<any>> -> memref<1x4096xf32, #tpu.memory_space<any>>
    %41 = tpu.memref_squeeze %40 : memref<1x4096xf32, #tpu.memory_space<any>> -> memref<4096xf32, #tpu.memory_space<any>>
    %c0_i32_14 = arith.constant 0 : i32
    %42 = tpu.memref_slice %arg3[%c4_i32, %c0_i32_14] : memref<16x4096xf32, #tpu.memory_space<vmem>> -> memref<1x4096xf32, #tpu.memory_space<vmem>>
    %43 = tpu.memref_squeeze %42 : memref<1x4096xf32, #tpu.memory_space<vmem>> -> memref<4096xf32, #tpu.memory_space<vmem>>
    %44 = tpu.memref_slice %arg4[%c0_i32_12] : memref<1x!tpu.dma_semaphore, #tpu.memory_space<semaphore_mem>> -> memref<1x!tpu.dma_semaphore, #tpu.memory_space<semaphore_mem>>
    %45 = tpu.memref_squeeze %44 : memref<1x!tpu.dma_semaphore, #tpu.memory_space<semaphore_mem>> -> memref<!tpu.dma_semaphore, #tpu.memory_space<semaphore_mem>>
    tpu.enqueue_dma source(%41 : memref<4096xf32, #tpu.memory_space<any>>) target(%43 : memref<4096xf32, #tpu.memory_space<vmem>>) target_semaphore(%45 : memref<!tpu.dma_semaphore, #tpu.memory_space<semaphore_mem>>)
    %c5_i32 = arith.constant 5 : i32
    %46 = arith.addi %0, %c5_i32 : i32
    %47 = arith.index_cast %46 : i32 to index
    %48 = memref.load %arg1[%47] : memref<16xi32, #tpu.memory_space<smem>>
    %c0_i32_15 = arith.constant 0 : i32
    %c0_i32_16 = arith.constant 0 : i32
    %49 = tpu.memref_slice %arg2[%48, %c0_i32_16] : memref<32000x4096xf32, #tpu.memory_space<any>> -> memref<1x4096xf32, #tpu.memory_space<any>>
    %50 = tpu.memref_squeeze %49 : memref<1x4096xf32, #tpu.memory_space<any>> -> memref<4096xf32, #tpu.memory_space<any>>
    %c0_i32_17 = arith.constant 0 : i32
    %51 = tpu.memref_slice %arg3[%c5_i32, %c0_i32_17] : memref<16x4096xf32, #tpu.memory_space<vmem>> -> memref<1x4096xf32, #tpu.memory_space<vmem>>
    %52 = tpu.memref_squeeze %51 : memref<1x4096xf32, #tpu.memory_space<vmem>> -> memref<4096xf32, #tpu.memory_space<vmem>>
    %53 = tpu.memref_slice %arg4[%c0_i32_15] : memref<1x!tpu.dma_semaphore, #tpu.memory_space<semaphore_mem>> -> memref<1x!tpu.dma_semaphore, #tpu.memory_space<semaphore_mem>>
    %54 = tpu.memref_squeeze %53 : memref<1x!tpu.dma_semaphore, #tpu.memory_space<semaphore_mem>> -> memref<!tpu.dma_semaphore, #tpu.memory_space<semaphore_mem>>
    tpu.enqueue_dma source(%50 : memref<4096xf32, #tpu.memory_space<any>>) target(%52 : memref<4096xf32, #tpu.memory_space<vmem>>) target_semaphore(%54 : memref<!tpu.dma_semaphore, #tpu.memory_space<semaphore_mem>>)
    %c6_i32 = arith.constant 6 : i32
    %55 = arith.addi %0, %c6_i32 : i32
    %56 = arith.index_cast %55 : i32 to index
    %57 = memref.load %arg1[%56] : memref<16xi32, #tpu.memory_space<smem>>
    %c0_i32_18 = arith.constant 0 : i32
    %c0_i32_19 = arith.constant 0 : i32
    %58 = tpu.memref_slice %arg2[%57, %c0_i32_19] : memref<32000x4096xf32, #tpu.memory_space<any>> -> memref<1x4096xf32, #tpu.memory_space<any>>
    %59 = tpu.memref_squeeze %58 : memref<1x4096xf32, #tpu.memory_space<any>> -> memref<4096xf32, #tpu.memory_space<any>>
    %c0_i32_20 = arith.constant 0 : i32
    %60 = tpu.memref_slice %arg3[%c6_i32, %c0_i32_20] : memref<16x4096xf32, #tpu.memory_space<vmem>> -> memref<1x4096xf32, #tpu.memory_space<vmem>>
    %61 = tpu.memref_squeeze %60 : memref<1x4096xf32, #tpu.memory_space<vmem>> -> memref<4096xf32, #tpu.memory_space<vmem>>
    %62 = tpu.memref_slice %arg4[%c0_i32_18] : memref<1x!tpu.dma_semaphore, #tpu.memory_space<semaphore_mem>> -> memref<1x!tpu.dma_semaphore, #tpu.memory_space<semaphore_mem>>
    %63 = tpu.memref_squeeze %62 : memref<1x!tpu.dma_semaphore, #tpu.memory_space<semaphore_mem>> -> memref<!tpu.dma_semaphore, #tpu.memory_space<semaphore_mem>>
    tpu.enqueue_dma source(%59 : memref<4096xf32, #tpu.memory_space<any>>) target(%61 : memref<4096xf32, #tpu.memory_space<vmem>>) target_semaphore(%63 : memref<!tpu.dma_semaphore, #tpu.memory_space<semaphore_mem>>)
    %c7_i32 = arith.constant 7 : i32
    %64 = arith.addi %0, %c7_i32 : i32
    %65 = arith.index_cast %64 : i32 to index
    %66 = memref.load %arg1[%65] : memref<16xi32, #tpu.memory_space<smem>>
    %c0_i32_21 = arith.constant 0 : i32
    %c0_i32_22 = arith.constant 0 : i32
    %67 = tpu.memref_slice %arg2[%66, %c0_i32_22] : memref<32000x4096xf32, #tpu.memory_space<any>> -> memref<1x4096xf32, #tpu.memory_space<any>>
    %68 = tpu.memref_squeeze %67 : memref<1x4096xf32, #tpu.memory_space<any>> -> memref<4096xf32, #tpu.memory_space<any>>
    %c0_i32_23 = arith.constant 0 : i32
    %69 = tpu.memref_slice %arg3[%c7_i32, %c0_i32_23] : memref<16x4096xf32, #tpu.memory_space<vmem>> -> memref<1x4096xf32, #tpu.memory_space<vmem>>
    %70 = tpu.memref_squeeze %69 : memref<1x4096xf32, #tpu.memory_space<vmem>> -> memref<4096xf32, #tpu.memory_space<vmem>>
    %71 = tpu.memref_slice %arg4[%c0_i32_21] : memref<1x!tpu.dma_semaphore, #tpu.memory_space<semaphore_mem>> -> memref<1x!tpu.dma_semaphore, #tpu.memory_space<semaphore_mem>>
    %72 = tpu.memref_squeeze %71 : memref<1x!tpu.dma_semaphore, #tpu.memory_space<semaphore_mem>> -> memref<!tpu.dma_semaphore, #tpu.memory_space<semaphore_mem>>
    tpu.enqueue_dma source(%68 : memref<4096xf32, #tpu.memory_space<any>>) target(%70 : memref<4096xf32, #tpu.memory_space<vmem>>) target_semaphore(%72 : memref<!tpu.dma_semaphore, #tpu.memory_space<semaphore_mem>>)
    %c8_i32 = arith.constant 8 : i32
    %73 = arith.addi %0, %c8_i32 : i32
    %74 = arith.index_cast %73 : i32 to index
    %75 = memref.load %arg1[%74] : memref<16xi32, #tpu.memory_space<smem>>
    %c0_i32_24 = arith.constant 0 : i32
    %c0_i32_25 = arith.constant 0 : i32
    %76 = tpu.memref_slice %arg2[%75, %c0_i32_25] : memref<32000x4096xf32, #tpu.memory_space<any>> -> memref<1x4096xf32, #tpu.memory_space<any>>
    %77 = tpu.memref_squeeze %76 : memref<1x4096xf32, #tpu.memory_space<any>> -> memref<4096xf32, #tpu.memory_space<any>>
    %c0_i32_26 = arith.constant 0 : i32
    %78 = tpu.memref_slice %arg3[%c8_i32, %c0_i32_26] : memref<16x4096xf32, #tpu.memory_space<vmem>> -> memref<1x4096xf32, #tpu.memory_space<vmem>>
    %79 = tpu.memref_squeeze %78 : memref<1x4096xf32, #tpu.memory_space<vmem>> -> memref<4096xf32, #tpu.memory_space<vmem>>
    %80 = tpu.memref_slice %arg4[%c0_i32_24] : memref<1x!tpu.dma_semaphore, #tpu.memory_space<semaphore_mem>> -> memref<1x!tpu.dma_semaphore, #tpu.memory_space<semaphore_mem>>
    %81 = tpu.memref_squeeze %80 : memref<1x!tpu.dma_semaphore, #tpu.memory_space<semaphore_mem>> -> memref<!tpu.dma_semaphore, #tpu.memory_space<semaphore_mem>>
    tpu.enqueue_dma source(%77 : memref<4096xf32, #tpu.memory_space<any>>) target(%79 : memref<4096xf32, #tpu.memory_space<vmem>>) target_semaphore(%81 : memref<!tpu.dma_semaphore, #tpu.memory_space<semaphore_mem>>)
    %c9_i32 = arith.constant 9 : i32
    %82 = arith.addi %0, %c9_i32 : i32
    %83 = arith.index_cast %82 : i32 to index
    %84 = memref.load %arg1[%83] : memref<16xi32, #tpu.memory_space<smem>>
    %c0_i32_27 = arith.constant 0 : i32
    %c0_i32_28 = arith.constant 0 : i32
    %85 = tpu.memref_slice %arg2[%84, %c0_i32_28] : memref<32000x4096xf32, #tpu.memory_space<any>> -> memref<1x4096xf32, #tpu.memory_space<any>>
    %86 = tpu.memref_squeeze %85 : memref<1x4096xf32, #tpu.memory_space<any>> -> memref<4096xf32, #tpu.memory_space<any>>
    %c0_i32_29 = arith.constant 0 : i32
    %87 = tpu.memref_slice %arg3[%c9_i32, %c0_i32_29] : memref<16x4096xf32, #tpu.memory_space<vmem>> -> memref<1x4096xf32, #tpu.memory_space<vmem>>
    %88 = tpu.memref_squeeze %87 : memref<1x4096xf32, #tpu.memory_space<vmem>> -> memref<4096xf32, #tpu.memory_space<vmem>>
    %89 = tpu.memref_slice %arg4[%c0_i32_27] : memref<1x!tpu.dma_semaphore, #tpu.memory_space<semaphore_mem>> -> memref<1x!tpu.dma_semaphore, #tpu.memory_space<semaphore_mem>>
    %90 = tpu.memref_squeeze %89 : memref<1x!tpu.dma_semaphore, #tpu.memory_space<semaphore_mem>> -> memref<!tpu.dma_semaphore, #tpu.memory_space<semaphore_mem>>
    tpu.enqueue_dma source(%86 : memref<4096xf32, #tpu.memory_space<any>>) target(%88 : memref<4096xf32, #tpu.memory_space<vmem>>) target_semaphore(%90 : memref<!tpu.dma_semaphore, #tpu.memory_space<semaphore_mem>>)
    %c10_i32 = arith.constant 10 : i32
    %91 = arith.addi %0, %c10_i32 : i32
    %92 = arith.index_cast %91 : i32 to index
    %93 = memref.load %arg1[%92] : memref<16xi32, #tpu.memory_space<smem>>
    %c0_i32_30 = arith.constant 0 : i32
    %c0_i32_31 = arith.constant 0 : i32
    %94 = tpu.memref_slice %arg2[%93, %c0_i32_31] : memref<32000x4096xf32, #tpu.memory_space<any>> -> memref<1x4096xf32, #tpu.memory_space<any>>
    %95 = tpu.memref_squeeze %94 : memref<1x4096xf32, #tpu.memory_space<any>> -> memref<4096xf32, #tpu.memory_space<any>>
    %c0_i32_32 = arith.constant 0 : i32
    %96 = tpu.memref_slice %arg3[%c10_i32, %c0_i32_32] : memref<16x4096xf32, #tpu.memory_space<vmem>> -> memref<1x4096xf32, #tpu.memory_space<vmem>>
    %97 = tpu.memref_squeeze %96 : memref<1x4096xf32, #tpu.memory_space<vmem>> -> memref<4096xf32, #tpu.memory_space<vmem>>
    %98 = tpu.memref_slice %arg4[%c0_i32_30] : memref<1x!tpu.dma_semaphore, #tpu.memory_space<semaphore_mem>> -> memref<1x!tpu.dma_semaphore, #tpu.memory_space<semaphore_mem>>
    %99 = tpu.memref_squeeze %98 : memref<1x!tpu.dma_semaphore, #tpu.memory_space<semaphore_mem>> -> memref<!tpu.dma_semaphore, #tpu.memory_space<semaphore_mem>>
    tpu.enqueue_dma source(%95 : memref<4096xf32, #tpu.memory_space<any>>) target(%97 : memref<4096xf32, #tpu.memory_space<vmem>>) target_semaphore(%99 : memref<!tpu.dma_semaphore, #tpu.memory_space<semaphore_mem>>)
    %c11_i32 = arith.constant 11 : i32
    %100 = arith.addi %0, %c11_i32 : i32
    %101 = arith.index_cast %100 : i32 to index
    %102 = memref.load %arg1[%101] : memref<16xi32, #tpu.memory_space<smem>>
    %c0_i32_33 = arith.constant 0 : i32
    %c0_i32_34 = arith.constant 0 : i32
    %103 = tpu.memref_slice %arg2[%102, %c0_i32_34] : memref<32000x4096xf32, #tpu.memory_space<any>> -> memref<1x4096xf32, #tpu.memory_space<any>>
    %104 = tpu.memref_squeeze %103 : memref<1x4096xf32, #tpu.memory_space<any>> -> memref<4096xf32, #tpu.memory_space<any>>
    %c0_i32_35 = arith.constant 0 : i32
    %105 = tpu.memref_slice %arg3[%c11_i32, %c0_i32_35] : memref<16x4096xf32, #tpu.memory_space<vmem>> -> memref<1x4096xf32, #tpu.memory_space<vmem>>
    %106 = tpu.memref_squeeze %105 : memref<1x4096xf32, #tpu.memory_space<vmem>> -> memref<4096xf32, #tpu.memory_space<vmem>>
    %107 = tpu.memref_slice %arg4[%c0_i32_33] : memref<1x!tpu.dma_semaphore, #tpu.memory_space<semaphore_mem>> -> memref<1x!tpu.dma_semaphore, #tpu.memory_space<semaphore_mem>>
    %108 = tpu.memref_squeeze %107 : memref<1x!tpu.dma_semaphore, #tpu.memory_space<semaphore_mem>> -> memref<!tpu.dma_semaphore, #tpu.memory_space<semaphore_mem>>
    tpu.enqueue_dma source(%104 : memref<4096xf32, #tpu.memory_space<any>>) target(%106 : memref<4096xf32, #tpu.memory_space<vmem>>) target_semaphore(%108 : memref<!tpu.dma_semaphore, #tpu.memory_space<semaphore_mem>>)
    %c12_i32 = arith.constant 12 : i32
    %109 = arith.addi %0, %c12_i32 : i32
    %110 = arith.index_cast %109 : i32 to index
    %111 = memref.load %arg1[%110] : memref<16xi32, #tpu.memory_space<smem>>
    %c0_i32_36 = arith.constant 0 : i32
    %c0_i32_37 = arith.constant 0 : i32
    %112 = tpu.memref_slice %arg2[%111, %c0_i32_37] : memref<32000x4096xf32, #tpu.memory_space<any>> -> memref<1x4096xf32, #tpu.memory_space<any>>
    %113 = tpu.memref_squeeze %112 : memref<1x4096xf32, #tpu.memory_space<any>> -> memref<4096xf32, #tpu.memory_space<any>>
    %c0_i32_38 = arith.constant 0 : i32
    %114 = tpu.memref_slice %arg3[%c12_i32, %c0_i32_38] : memref<16x4096xf32, #tpu.memory_space<vmem>> -> memref<1x4096xf32, #tpu.memory_space<vmem>>
    %115 = tpu.memref_squeeze %114 : memref<1x4096xf32, #tpu.memory_space<vmem>> -> memref<4096xf32, #tpu.memory_space<vmem>>
    %116 = tpu.memref_slice %arg4[%c0_i32_36] : memref<1x!tpu.dma_semaphore, #tpu.memory_space<semaphore_mem>> -> memref<1x!tpu.dma_semaphore, #tpu.memory_space<semaphore_mem>>
    %117 = tpu.memref_squeeze %116 : memref<1x!tpu.dma_semaphore, #tpu.memory_space<semaphore_mem>> -> memref<!tpu.dma_semaphore, #tpu.memory_space<semaphore_mem>>
    tpu.enqueue_dma source(%113 : memref<4096xf32, #tpu.memory_space<any>>) target(%115 : memref<4096xf32, #tpu.memory_space<vmem>>) target_semaphore(%117 : memref<!tpu.dma_semaphore, #tpu.memory_space<semaphore_mem>>)
    %c13_i32 = arith.constant 13 : i32
    %118 = arith.addi %0, %c13_i32 : i32
    %119 = arith.index_cast %118 : i32 to index
    %120 = memref.load %arg1[%119] : memref<16xi32, #tpu.memory_space<smem>>
    %c0_i32_39 = arith.constant 0 : i32
    %c0_i32_40 = arith.constant 0 : i32
    %121 = tpu.memref_slice %arg2[%120, %c0_i32_40] : memref<32000x4096xf32, #tpu.memory_space<any>> -> memref<1x4096xf32, #tpu.memory_space<any>>
    %122 = tpu.memref_squeeze %121 : memref<1x4096xf32, #tpu.memory_space<any>> -> memref<4096xf32, #tpu.memory_space<any>>
    %c0_i32_41 = arith.constant 0 : i32
    %123 = tpu.memref_slice %arg3[%c13_i32, %c0_i32_41] : memref<16x4096xf32, #tpu.memory_space<vmem>> -> memref<1x4096xf32, #tpu.memory_space<vmem>>
    %124 = tpu.memref_squeeze %123 : memref<1x4096xf32, #tpu.memory_space<vmem>> -> memref<4096xf32, #tpu.memory_space<vmem>>
    %125 = tpu.memref_slice %arg4[%c0_i32_39] : memref<1x!tpu.dma_semaphore, #tpu.memory_space<semaphore_mem>> -> memref<1x!tpu.dma_semaphore, #tpu.memory_space<semaphore_mem>>
    %126 = tpu.memref_squeeze %125 : memref<1x!tpu.dma_semaphore, #tpu.memory_space<semaphore_mem>> -> memref<!tpu.dma_semaphore, #tpu.memory_space<semaphore_mem>>
    tpu.enqueue_dma source(%122 : memref<4096xf32, #tpu.memory_space<any>>) target(%124 : memref<4096xf32, #tpu.memory_space<vmem>>) target_semaphore(%126 : memref<!tpu.dma_semaphore, #tpu.memory_space<semaphore_mem>>)
    %c14_i32 = arith.constant 14 : i32
    %127 = arith.addi %0, %c14_i32 : i32
    %128 = arith.index_cast %127 : i32 to index
    %129 = memref.load %arg1[%128] : memref<16xi32, #tpu.memory_space<smem>>
    %c0_i32_42 = arith.constant 0 : i32
    %c0_i32_43 = arith.constant 0 : i32
    %130 = tpu.memref_slice %arg2[%129, %c0_i32_43] : memref<32000x4096xf32, #tpu.memory_space<any>> -> memref<1x4096xf32, #tpu.memory_space<any>>
    %131 = tpu.memref_squeeze %130 : memref<1x4096xf32, #tpu.memory_space<any>> -> memref<4096xf32, #tpu.memory_space<any>>
    %c0_i32_44 = arith.constant 0 : i32
    %132 = tpu.memref_slice %arg3[%c14_i32, %c0_i32_44] : memref<16x4096xf32, #tpu.memory_space<vmem>> -> memref<1x4096xf32, #tpu.memory_space<vmem>>
    %133 = tpu.memref_squeeze %132 : memref<1x4096xf32, #tpu.memory_space<vmem>> -> memref<4096xf32, #tpu.memory_space<vmem>>
    %134 = tpu.memref_slice %arg4[%c0_i32_42] : memref<1x!tpu.dma_semaphore, #tpu.memory_space<semaphore_mem>> -> memref<1x!tpu.dma_semaphore, #tpu.memory_space<semaphore_mem>>
    %135 = tpu.memref_squeeze %134 : memref<1x!tpu.dma_semaphore, #tpu.memory_space<semaphore_mem>> -> memref<!tpu.dma_semaphore, #tpu.memory_space<semaphore_mem>>
    tpu.enqueue_dma source(%131 : memref<4096xf32, #tpu.memory_space<any>>) target(%133 : memref<4096xf32, #tpu.memory_space<vmem>>) target_semaphore(%135 : memref<!tpu.dma_semaphore, #tpu.memory_space<semaphore_mem>>)
    %c15_i32 = arith.constant 15 : i32
    %136 = arith.addi %0, %c15_i32 : i32
    %137 = arith.index_cast %136 : i32 to index
    %138 = memref.load %arg1[%137] : memref<16xi32, #tpu.memory_space<smem>>
    %c0_i32_45 = arith.constant 0 : i32
    %c0_i32_46 = arith.constant 0 : i32
    %139 = tpu.memref_slice %arg2[%138, %c0_i32_46] : memref<32000x4096xf32, #tpu.memory_space<any>> -> memref<1x4096xf32, #tpu.memory_space<any>>
    %140 = tpu.memref_squeeze %139 : memref<1x4096xf32, #tpu.memory_space<any>> -> memref<4096xf32, #tpu.memory_space<any>>
    %c0_i32_47 = arith.constant 0 : i32
    %141 = tpu.memref_slice %arg3[%c15_i32, %c0_i32_47] : memref<16x4096xf32, #tpu.memory_space<vmem>> -> memref<1x4096xf32, #tpu.memory_space<vmem>>
    %142 = tpu.memref_squeeze %141 : memref<1x4096xf32, #tpu.memory_space<vmem>> -> memref<4096xf32, #tpu.memory_space<vmem>>
    %143 = tpu.memref_slice %arg4[%c0_i32_45] : memref<1x!tpu.dma_semaphore, #tpu.memory_space<semaphore_mem>> -> memref<1x!tpu.dma_semaphore, #tpu.memory_space<semaphore_mem>>
    %144 = tpu.memref_squeeze %143 : memref<1x!tpu.dma_semaphore, #tpu.memory_space<semaphore_mem>> -> memref<!tpu.dma_semaphore, #tpu.memory_space<semaphore_mem>>
    tpu.enqueue_dma source(%140 : memref<4096xf32, #tpu.memory_space<any>>) target(%142 : memref<4096xf32, #tpu.memory_space<vmem>>) target_semaphore(%144 : memref<!tpu.dma_semaphore, #tpu.memory_space<semaphore_mem>>)
    %c16_i32_48 = arith.constant 16 : i32
    %c0_i32_49 = arith.constant 0 : i32
    %c0_i32_50 = arith.constant 0 : i32
    %c0_i32_51 = arith.constant 0 : i32
    %145 = tpu.memref_slice %arg2[%c0_i32_50, %c0_i32_51] : memref<32000x4096xf32, #tpu.memory_space<any>> -> memref<16x4096xf32, #tpu.memory_space<any>>
    %c0_i32_52 = arith.constant 0 : i32
    %c0_i32_53 = arith.constant 0 : i32
    %146 = tpu.memref_slice %arg3[%c0_i32_52, %c0_i32_53] : memref<16x4096xf32, #tpu.memory_space<vmem>> -> memref<16x4096xf32, #tpu.memory_space<vmem>>
    %147 = tpu.memref_slice %arg4[%c0_i32_49] : memref<1x!tpu.dma_semaphore, #tpu.memory_space<semaphore_mem>> -> memref<1x!tpu.dma_semaphore, #tpu.memory_space<semaphore_mem>>
    %148 = tpu.memref_squeeze %147 : memref<1x!tpu.dma_semaphore, #tpu.memory_space<semaphore_mem>> -> memref<!tpu.dma_semaphore, #tpu.memory_space<semaphore_mem>>
    tpu.wait_dma2 semaphore(%148 : memref<!tpu.dma_semaphore, #tpu.memory_space<semaphore_mem>>) src(%145 : memref<16x4096xf32, #tpu.memory_space<any>>) dst(%146 : memref<16x4096xf32, #tpu.memory_space<vmem>>)
    return
  }
  func.func @transform_1(%arg0: i32, %arg1: memref<16xi32, #tpu.memory_space<smem>>) -> (i32, i32) {
    %c0_i32 = arith.constant 0 : i32
    %c0_i32_0 = arith.constant 0 : i32
    return %arg0, %c0_i32 : i32, i32
  }
}

</mosaic_0001>

<bundles_post_ra>
// kernel: tpu_custom_call.1
= control target key start
LH: loop header
LB: loop body
LE: loop exit
PB: predicated region body
PF: predicated region fallthrough
CT: control target
= control target key end

     0   :  { %s780_s9 = smov [#allocation4]   ;;  %s1141_s0 = inlined_call_operand.hbm [shape: s32[16], index: 0, kind: input, shape index: {}]   ;;  %s1142_s1 = inlined_call_operand.hbm [shape: f32[32000,4096], index: 1, kind: input, shape index: {}]   ;;  %s1143_s2 = inlined_call_operand.hbm [shape: f32[16,4096], index: 2, kind: output, shape index: {}]  }
   0x1   :  { %8 = dma.hbm_to_smem %s1141_s0, 16, %s780_s9, [#allocation3] }
   0x2   :  { %774 = dma.done.wait [#allocation3], 16 }
   0x3   :  { %775 = vsyncadd [#allocation3], 4294967280 }
   0x4   :  { %10 = sfence }
   0x5   :  { %11 = vsyncpa [#allocation6], 0  ;;  %s13_s12 = sld [smem:[#allocation4]]  ;;  %s781_s13 = smov [#allocation5]  }
   0x6   :  { %s21_s14 = sshll.u32 %s781_s13, 4  ;;  %s821_s15 = sld [smem:[#allocation4 + $0x1]]  ;;  %s819_s14 = int_to_ptr.vmem [resolvable:$true] %s21_s14 }
   0x7   :  { %s782_s16 = smov [#allocation5 + $0x1]   ;;  %s823_s18 = sld [smem:[#allocation4 + $0x2]] }
   0x8   :  { %s35_s17 = sshll.u32 %s782_s16, 4  ;;  %s783_s21 = smov [#allocation5 + $0x2]   ;;  %s825_s17 = int_to_ptr.vmem [resolvable:$true] %s35_s17 }
   0x9   :  { %s49_s22 = sshll.u32 %s783_s21, 4  ;;  %s837_s5 = scalar_lea.hbm %s1142_s1, 16384000  ;;  %s827_s22 = int_to_ptr.vmem [resolvable:$true] %s49_s22 }
   0xb   :  { %s14_s0 = sshrl.u32 %s13_s12, 3  ;;  %s15_s19 = sand.u32 7, %s13_s12  }
   0xc   :  { %s325_s20 = sshll.u32 %s14_s0, 8  ;;  %s27_s25 = sshrl.u32 %s821_s15, 3 }
   0xd   :  { %s17_s23 = sadd.s32 %s325_s20, %s15_s19  ;;  %s28_s29 = sand.u32 7, %s821_s15  }
   0xe   :  { %s326_s24 = sshll.u32 %s17_s23, 4 }
   0xf   :  { %s19_s28 = scalar_lea.hbm %s1142_s1, %s326_s24 }
  0x10   :  { %s402_s30 = scalar_lea.hbm %s19_s28, 512  ;;  %p405_p1 = scmp.lt.s32.totalorder %s19_s28, %s1142_s1 }
  0x11   :  { %p403_p0 = scmp.ne.s32.totalorder %s19_s28, %s402_s30  ;;  %p406_p2 = scmp.lt.s32.totalorder %s837_s5, %s402_s30 }
  0x13   :  { %p407_p3 = por %p406_p2, %p405_p1 }
  0x15   :  { %p408_p4 = pnand %p407_p3, %p403_p0 }
  0x17   :  { %411 = shalt.err (!%p408_p4)  }
  0x18   :  { %s412_s8 = scalar_lea.vmem %s819_s14, 512  ;;  %s846_s9 = scalar_lea.vmem %s819_s14, 8192 }
  0x19   :  { %p413_p5 = scmp.ne.s32.totalorder %s819_s14, %s412_s8  ;;  %p417_p6 = scmp.lt.s32.totalorder %s819_s14, %s819_s14 }
  0x1a   :  { %p418_p7 = scmp.lt.s32.totalorder %s846_s9, %s412_s8 }
  0x1c   :  { %p419_p8 = por %p418_p7, %p417_p6 }
  0x1e   :  { %p420_p9 = pnand %p419_p8, %p413_p5 }
  0x20   :  { %423 = shalt.err (!%p420_p9)  }
  0x21   :  { %s784_s10 = smov 128   ;;  %s785_s11 = smov 1  }
  0x22   :  { %24 = dma.hbm_to_vmem [thread:$0]  %s19_s28, 512, %s819_s14, [#allocation2], %s784_s10, %s784_s10, %s785_s11 }
  0x23   :  { %s328_s12 = sshll.u32 %s27_s25, 8  ;;  %s41_s13 = sshrl.u32 %s823_s18, 3 }
  0x24   :  { %s30_s15 = sadd.s32 %s328_s12, %s28_s29  ;;  %s42_s16 = sand.u32 7, %s823_s18  }
  0x25   :  { %s329_s0 = sshll.u32 %s30_s15, 4  ;;  %s331_s19 = sshll.u32 %s41_s13, 8 }
  0x26   :  { %s32_s23 = scalar_lea.hbm %s1142_s1, %s329_s0  ;;  %s44_s24 = sadd.s32 %s331_s19, %s42_s16 }
  0x27   :  { %s424_s26 = scalar_lea.hbm %s32_s23, 512  ;;  %p427_p11 = scmp.lt.s32.totalorder %s32_s23, %s1142_s1 }
  0x28   :  { %p425_p10 = scmp.ne.s32.totalorder %s32_s23, %s424_s26  ;;  %p428_p12 = scmp.lt.s32.totalorder %s837_s5, %s424_s26 }
  0x2a   :  { %p429_p13 = por %p428_p12, %p427_p11 }
  0x2c   :  { %p430_p0 = pnand %p429_p13, %p425_p10 }
  0x2e   :  { %433 = shalt.err (!%p430_p0)  }
  0x2f   :  { %s434_s18 = scalar_lea.vmem %s825_s17, 512  ;;  %p439_p2 = scmp.lt.s32.totalorder %s825_s17, %s819_s14 }
  0x30   :  { %p435_p1 = scmp.ne.s32.totalorder %s825_s17, %s434_s18  ;;  %p440_p3 = scmp.lt.s32.totalorder %s846_s9, %s434_s18 }
  0x32   :  { %p441_p4 = por %p440_p3, %p439_p2 }
  0x34   :  { %p442_p5 = pnand %p441_p4, %p435_p1 }
  0x36   :  { %445 = shalt.err (!%p442_p5)  }
  0x37   :  { %38 = dma.hbm_to_vmem [thread:$0]  %s32_s23, 512, %s825_s17, [#allocation2], %s784_s10, %s784_s10, %s785_s11 }
  0x38   :  { %s332_s25 = sshll.u32 %s44_s24, 4  ;;  %s876_s28 = sld [smem:[#allocation4 + $0x3]] }
  0x39   :  { %s46_s4 = scalar_lea.hbm %s1142_s1, %s332_s25 }
  0x3a   :  { %s446_s6 = scalar_lea.hbm %s46_s4, 512  ;;  %p449_p8 = scmp.lt.s32.totalorder %s46_s4, %s1142_s1 }
  0x3b   :  { %p447_p7 = scmp.ne.s32.totalorder %s46_s4, %s446_s6  ;;  %p450_p9 = scmp.lt.s32.totalorder %s837_s5, %s446_s6 }
  0x3d   :  { %p451_p10 = por %p450_p9, %p449_p8 }
  0x3f   :  { %p452_p11 = pnand %p451_p10, %p447_p7 }
  0x41   :  { %455 = shalt.err (!%p452_p11)  }
  0x42   :  { %s456_s17 = scalar_lea.vmem %s827_s22, 512  ;;  %p461_p13 = scmp.lt.s32.totalorder %s827_s22, %s819_s14 }
  0x43   :  { %p457_p12 = scmp.ne.s32.totalorder %s827_s22, %s456_s17  ;;  %p462_p0 = scmp.lt.s32.totalorder %s846_s9, %s456_s17 }
  0x45   :  { %p463_p1 = por %p462_p0, %p461_p13 }
  0x47   :  { %p464_p2 = pnand %p463_p1, %p457_p12 }
  0x49   :  { %467 = shalt.err (!%p464_p2)  }
  0x4a   :  { %52 = dma.hbm_to_vmem [thread:$0]  %s46_s4, 512, %s827_s22, [#allocation2], %s784_s10, %s784_s10, %s785_s11 }
  0x4b   :  { %s786_s12 = smov [#allocation5 + $0x3]   ;;  %s894_s15 = sld [smem:[#allocation4 + $0x4]] }
  0x4c   :  { %s63_s13 = sshll.u32 %s786_s12, 4  ;;  %s787_s16 = smov [#allocation5 + $0x4]   ;;  %s896_s13 = int_to_ptr.vmem [resolvable:$true] %s63_s13 }
  0x4d   :  { %s77_s0 = sshll.u32 %s787_s16, 4  ;;  %s898_s19 = sld [smem:[#allocation4 + $0x5]]  ;;  %s902_s0 = int_to_ptr.vmem [resolvable:$true] %s77_s0 }
  0x4e   :  { %s55_s20 = sshrl.u32 %s876_s28, 3  ;;  %s56_s21 = sand.u32 7, %s876_s28  }
  0x4f   :  { %s334_s23 = sshll.u32 %s55_s20, 8 }
  0x50   :  { %s58_s24 = sadd.s32 %s334_s23, %s56_s21 }
  0x51   :  { %s335_s22 = sshll.u32 %s58_s24, 4  ;;  %s69_s26 = sshrl.u32 %s894_s15, 3 }
  0x52   :  { %s60_s18 = scalar_lea.hbm %s1142_s1, %s335_s22  ;;  %s70_s25 = sand.u32 7, %s894_s15  }
  0x53   :  { %s468_s29 = scalar_lea.hbm %s60_s18, 512  ;;  %p471_p4 = scmp.lt.s32.totalorder %s60_s18, %s1142_s1 }
  0x54   :  { %p469_p3 = scmp.ne.s32.totalorder %s60_s18, %s468_s29  ;;  %p472_p5 = scmp.lt.s32.totalorder %s837_s5, %s468_s29 }
  0x56   :  { %p473_p7 = por %p472_p5, %p471_p4 }
  0x58   :  { %p474_p8 = pnand %p473_p7, %p469_p3 }
  0x5a   :  { %477 = shalt.err (!%p474_p8)  }
  0x5b   :  { %s478_s28 = scalar_lea.vmem %s896_s13, 512  ;;  %p483_p10 = scmp.lt.s32.totalorder %s896_s13, %s819_s14 }
  0x5c   :  { %p479_p9 = scmp.ne.s32.totalorder %s896_s13, %s478_s28  ;;  %p484_p11 = scmp.lt.s32.totalorder %s846_s9, %s478_s28 }
  0x5e   :  { %p485_p12 = por %p484_p11, %p483_p10 }
  0x60   :  { %p486_p13 = pnand %p485_p12, %p479_p9 }
  0x62   :  { %489 = shalt.err (!%p486_p13)  }
  0x63   :  { %66 = dma.hbm_to_vmem [thread:$0]  %s60_s18, 512, %s896_s13, [#allocation2], %s784_s10, %s784_s10, %s785_s11 }
  0x64   :  { %s337_s6 = sshll.u32 %s69_s26, 8  ;;  %s83_s7 = sshrl.u32 %s898_s19, 3 }
  0x65   :  { %s72_s8 = sadd.s32 %s337_s6, %s70_s25  ;;  %s84_s17 = sand.u32 7, %s898_s19  }
  0x66   :  { %s338_s12 = sshll.u32 %s72_s8, 4  ;;  %s340_s15 = sshll.u32 %s83_s7, 8 }
  0x67   :  { %s74_s21 = scalar_lea.hbm %s1142_s1, %s338_s12  ;;  %s86_s23 = sadd.s32 %s340_s15, %s84_s17 }
  0x68   :  { %s490_s24 = scalar_lea.hbm %s74_s21, 512  ;;  %p493_p1 = scmp.lt.s32.totalorder %s74_s21, %s1142_s1 }
  0x69   :  { %p491_p0 = scmp.ne.s32.totalorder %s74_s21, %s490_s24  ;;  %p494_p2 = scmp.lt.s32.totalorder %s837_s5, %s490_s24 }
  0x6b   :  { %p495_p3 = por %p494_p2, %p493_p1 }
  0x6d   :  { %p496_p4 = pnand %p495_p3, %p491_p0 }
  0x6f   :  { %499 = shalt.err (!%p496_p4)  }
  0x70   :  { %s500_s13 = scalar_lea.vmem %s902_s0, 512  ;;  %p505_p7 = scmp.lt.s32.totalorder %s902_s0, %s819_s14 }
  0x71   :  { %p501_p5 = scmp.ne.s32.totalorder %s902_s0, %s500_s13  ;;  %p506_p8 = scmp.lt.s32.totalorder %s846_s9, %s500_s13 }
  0x73   :  { %p507_p9 = por %p506_p8, %p505_p7 }
  0x75   :  { %p508_p10 = pnand %p507_p9, %p501_p5 }
  0x77   :  { %511 = shalt.err (!%p508_p10)  }
  0x78   :  { %80 = dma.hbm_to_vmem [thread:$0]  %s74_s21, 512, %s902_s0, [#allocation2], %s784_s10, %s784_s10, %s785_s11 }
  0x79   :  { %s341_s19 = sshll.u32 %s86_s23, 4  ;;  %s788_s26 = smov [#allocation5 + $0x5]  }
  0x7a   :  { %s91_s30 = sshll.u32 %s788_s26, 4  ;;  %s88_s29 = scalar_lea.hbm %s1142_s1, %s341_s19  ;;  %s92_s30 = int_to_ptr.vmem [resolvable:$true] %s91_s30 }
  0x7b   :  { %s512_s3 = scalar_lea.hbm %s88_s29, 512  ;;  %p515_p12 = scmp.lt.s32.totalorder %s88_s29, %s1142_s1 }
  0x7c   :  { %p513_p11 = scmp.ne.s32.totalorder %s88_s29, %s512_s3  ;;  %p516_p13 = scmp.lt.s32.totalorder %s837_s5, %s512_s3 }
  0x7e   :  { %p517_p0 = por %p516_p13, %p515_p12 }
  0x80   :  { %p518_p1 = pnand %p517_p0, %p513_p11 }
  0x82   :  { %521 = shalt.err (!%p518_p1)  }
  0x83   :  { %s522_s6 = scalar_lea.vmem %s92_s30, 512  ;;  %p527_p3 = scmp.lt.s32.totalorder %s92_s30, %s819_s14 }
  0x84   :  { %p523_p2 = scmp.ne.s32.totalorder %s92_s30, %s522_s6  ;;  %p528_p4 = scmp.lt.s32.totalorder %s846_s9, %s522_s6 }
  0x86   :  { %p529_p5 = por %p528_p4, %p527_p3 }
  0x88   :  { %p530_p7 = pnand %p529_p5, %p523_p2 }
  0x8a   :  { %533 = shalt.err (!%p530_p7)  }
  0x8b   :  { %94 = dma.hbm_to_vmem [thread:$0]  %s88_s29, 512, %s92_s30, [#allocation2], %s784_s10, %s784_s10, %s785_s11 }
  0x8c   :  { %s342_s0 = sld [smem:[#allocation4 + $0x6]]  ;;  %s789_s7 = smov [#allocation5 + $0x6]  }
  0x8d   :  { %s105_s8 = sshll.u32 %s789_s7, 4  ;;  %s345_s17 = sld [smem:[#allocation4 + $0x7]]  ;;  %s952_s8 = int_to_ptr.vmem [resolvable:$true] %s105_s8 }
  0x8e   :  { %s790_s12 = smov [#allocation5 + $0x7]   ;;  %s954_s16 = sld [smem:[#allocation4 + $0x8]] }
  0x8f   :  { %s119_s15 = sshll.u32 %s790_s12, 4  ;;  %s791_s20 = smov [#allocation5 + $0x100]   ;;  %s956_s15 = int_to_ptr.vmem [resolvable:$true] %s119_s15 }
  0x90   :  { %s958_s21 = sshll.u32 %s791_s20, 4  ;;  %s960_s23 = sld [smem:[#allocation4 + $0x9]]  ;;  %s134_s21 = int_to_ptr.vmem [resolvable:$true] %s958_s21 }
  0x92   :  { %s97_s24 = sshrl.u32 %s342_s0, 3  ;;  %s98_s22 = sand.u32 7, %s342_s0  }
  0x93   :  { %s343_s27 = sshll.u32 %s97_s24, 8  ;;  %s111_s13 = sshrl.u32 %s345_s17, 3 }
  0x94   :  { %s100_s19 = sadd.s32 %s343_s27, %s98_s22  ;;  %s112_s26 = sand.u32 7, %s345_s17  }
  0x95   :  { %s344_s30 = sshll.u32 %s100_s19, 4  ;;  %s346_s18 = sshll.u32 %s111_s13, 8 }
  0x96   :  { %s102_s3 = scalar_lea.hbm %s1142_s1, %s344_s30  ;;  %s114_s4 = sadd.s32 %s346_s18, %s112_s26 }
  0x97   :  { %s534_s28 = scalar_lea.hbm %s102_s3, 512  ;;  %p537_p9 = scmp.lt.s32.totalorder %s102_s3, %s1142_s1 }
  0x98   :  { %p535_p8 = scmp.ne.s32.totalorder %s102_s3, %s534_s28  ;;  %p538_p10 = scmp.lt.s32.totalorder %s837_s5, %s534_s28 }
  0x9a   :  { %p539_p11 = por %p538_p10, %p537_p9 }
  0x9c   :  { %p540_p12 = pnand %p539_p11, %p535_p8 }
  0x9e   :  { %543 = shalt.err (!%p540_p12)  }
  0x9f   :  { %s544_s0 = scalar_lea.vmem %s952_s8, 512  ;;  %p549_p0 = scmp.lt.s32.totalorder %s952_s8, %s819_s14 }
  0xa0   :  { %p545_p13 = scmp.ne.s32.totalorder %s952_s8, %s544_s0  ;;  %p550_p1 = scmp.lt.s32.totalorder %s846_s9, %s544_s0 }
  0xa2   :  { %p551_p2 = por %p550_p1, %p549_p0 }
  0xa4   :  { %p552_p3 = pnand %p551_p2, %p545_p13 }
  0xa6   :  { %555 = shalt.err (!%p552_p3)  }
  0xa7   :  { %108 = dma.hbm_to_vmem [thread:$0]  %s102_s3, 512, %s952_s8, [#allocation2], %s784_s10, %s784_s10, %s785_s11 }
  0xa8   :  { %s347_s17 = sshll.u32 %s114_s4, 4  ;;  %s125_s12 = sshrl.u32 %s954_s16, 3 }
  0xa9   :  { %s116_s22 = scalar_lea.hbm %s1142_s1, %s347_s17  ;;  %s126_s27 = sand.u32 7, %s954_s16  }
  0xaa   :  { %s556_s13 = scalar_lea.hbm %s116_s22, 512  ;;  %p559_p5 = scmp.lt.s32.totalorder %s116_s22, %s1142_s1 }
  0xab   :  { %p557_p4 = scmp.ne.s32.totalorder %s116_s22, %s556_s13  ;;  %p560_p7 = scmp.lt.s32.totalorder %s837_s5, %s556_s13 }
  0xad   :  { %p561_p8 = por %p560_p7, %p559_p5 }
  0xaf   :  { %p562_p9 = pnand %p561_p8, %p557_p4 }
  0xb1   :  { %565 = shalt.err (!%p562_p9)  }
  0xb2   :  { %s566_s8 = scalar_lea.vmem %s956_s15, 512  ;;  %p571_p11 = scmp.lt.s32.totalorder %s956_s15, %s819_s14 }
  0xb3   :  { %p567_p10 = scmp.ne.s32.totalorder %s956_s15, %s566_s8  ;;  %p572_p12 = scmp.lt.s32.totalorder %s846_s9, %s566_s8 }
  0xb5   :  { %p573_p13 = por %p572_p12, %p571_p11 }
  0xb7   :  { %p574_p0 = pnand %p573_p13, %p567_p10 }
  0xb9   :  { %577 = shalt.err (!%p574_p0)  }
  0xba   :  { %122 = dma.hbm_to_vmem [thread:$0]  %s116_s22, 512, %s956_s15, [#allocation2], %s784_s10, %s784_s10, %s785_s11 }
  0xbb   :  { %s349_s16 = sshll.u32 %s125_s12, 8  ;;  %s139_s18 = sshrl.u32 %s960_s23, 3 }
  0xbc   :  { %s128_s30 = sadd.s32 %s349_s16, %s126_s27  ;;  %s140_s29 = sand.u32 7, %s960_s23  }
  0xbd   :  { %s350_s25 = sshll.u32 %s128_s30, 4  ;;  %s352_s6 = sshll.u32 %s139_s18, 8 }
  0xbe   :  { %s130_s28 = scalar_lea.hbm %s1142_s1, %s350_s25 }
  0xbf   :  { %s578_s7 = scalar_lea.hbm %s130_s28, 512  ;;  %p581_p2 = scmp.lt.s32.totalorder %s130_s28, %s1142_s1 }
  0xc0   :  { %p579_p1 = scmp.ne.s32.totalorder %s130_s28, %s578_s7  ;;  %p582_p3 = scmp.lt.s32.totalorder %s837_s5, %s578_s7 }
  0xc2   :  { %p583_p4 = por %p582_p3, %p581_p2 }
  0xc4   :  { %p584_p5 = pnand %p583_p4, %p579_p1 }
  0xc6   :  { %587 = shalt.err (!%p584_p5)  }
  0xc7   :  { %s588_s15 = scalar_lea.vmem %s134_s21, 512  ;;  %p593_p8 = scmp.lt.s32.totalorder %s134_s21, %s819_s14 }
  0xc8   :  { %p589_p7 = scmp.ne.s32.totalorder %s134_s21, %s588_s15  ;;  %p594_p9 = scmp.lt.s32.totalorder %s846_s9, %s588_s15 }
  0xca   :  { %p595_p10 = por %p594_p9, %p593_p8 }
  0xcc   :  { %p596_p11 = pnand %p595_p10, %p589_p7 }
  0xce   :  { %599 = shalt.err (!%p596_p11)  }
  0xcf   :  { %136 = dma.hbm_to_vmem [thread:$0]  %s130_s28, 512, %s134_s21, [#allocation2], %s784_s10, %s784_s10, %s785_s11 }
  0xd0   :  { %s142_s23 = sadd.s32 %s352_s6, %s140_s29  ;;  %s792_s20 = smov [#allocation5 + $0x101]  }
  0xd1   :  { %s353_s12 = sshll.u32 %s142_s23, 4  ;;  %s147_s24 = sshll.u32 %s792_s20, 4  ;;  %s148_s24 = int_to_ptr.vmem [resolvable:$true] %s147_s24 }
  0xd2   :  { %s144_s13 = scalar_lea.hbm %s1142_s1, %s353_s12 }
  0xd3   :  { %s600_s19 = scalar_lea.hbm %s144_s13, 512  ;;  %p603_p13 = scmp.lt.s32.totalorder %s144_s13, %s1142_s1 }
  0xd4   :  { %p601_p12 = scmp.ne.s32.totalorder %s144_s13, %s600_s19  ;;  %p604_p0 = scmp.lt.s32.totalorder %s837_s5, %s600_s19 }
  0xd6   :  { %p605_p1 = por %p604_p0, %p603_p13 }
  0xd8   :  { %p606_p2 = pnand %p605_p1, %p601_p12 }
  0xda   :  { %609 = shalt.err (!%p606_p2)  }
  0xdb   :  { %s610_s21 = scalar_lea.vmem %s148_s24, 512  ;;  %p615_p4 = scmp.lt.s32.totalorder %s148_s24, %s819_s14 }
  0xdc   :  { %p611_p3 = scmp.ne.s32.totalorder %s148_s24, %s610_s21  ;;  %p616_p5 = scmp.lt.s32.totalorder %s846_s9, %s610_s21 }
  0xde   :  { %p617_p7 = por %p616_p5, %p615_p4 }
  0xe0   :  { %p618_p8 = pnand %p617_p7, %p611_p3 }
  0xe2   :  { %621 = shalt.err (!%p618_p8)  }
  0xe3   :  { %150 = dma.hbm_to_vmem [thread:$0]  %s144_s13, 512, %s148_s24, [#allocation2], %s784_s10, %s784_s10, %s785_s11 }
  0xe4   :  { %s354_s16 = sld [smem:[#allocation4 + $0xa]]  ;;  %s793_s30 = smov [#allocation5 + $0x102]  }
  0xe5   :  { %s161_s18 = sshll.u32 %s793_s30, 4  ;;  %s357_s25 = sld [smem:[#allocation4 + $0xb]]  ;;  %s1023_s18 = int_to_ptr.vmem [resolvable:$true] %s161_s18 }
  0xe6   :  { %s794_s29 = smov [#allocation5 + $0x103]   ;;  %s1025_s4 = sld [smem:[#allocation4 + $0xc]] }
  0xe7   :  { %s175_s3 = sshll.u32 %s794_s29, 4  ;;  %s795_s28 = smov [#allocation5 + $0x104]   ;;  %s1027_s3 = int_to_ptr.vmem [resolvable:$true] %s175_s3 }
  0xe8   :  { %s1029_s6 = sshll.u32 %s795_s28, 4  ;;  %s1031_s7 = sld [smem:[#allocation4 + $0xd]]  ;;  %s190_s6 = int_to_ptr.vmem [resolvable:$true] %s1029_s6 }
  0xea   :  { %s153_s0 = sshrl.u32 %s354_s16, 3  ;;  %s154_s17 = sand.u32 7, %s354_s16  }
  0xeb   :  { %s355_s15 = sshll.u32 %s153_s0, 8  ;;  %s167_s23 = sshrl.u32 %s357_s25, 3 }
  0xec   :  { %s156_s12 = sadd.s32 %s355_s15, %s154_s17  ;;  %s168_s20 = sand.u32 7, %s357_s25  }
  0xed   :  { %s356_s24 = sshll.u32 %s156_s12, 4  ;;  %s358_s22 = sshll.u32 %s167_s23, 8 }
  0xee   :  { %s158_s19 = scalar_lea.hbm %s1142_s1, %s356_s24  ;;  %s170_s26 = sadd.s32 %s358_s22, %s168_s20 }
  0xef   :  { %s622_s8 = scalar_lea.hbm %s158_s19, 512  ;;  %p625_p10 = scmp.lt.s32.totalorder %s158_s19, %s1142_s1 }
  0xf0   :  { %p623_p9 = scmp.ne.s32.totalorder %s158_s19, %s622_s8  ;;  %p626_p11 = scmp.lt.s32.totalorder %s837_s5, %s622_s8 }
  0xf2   :  { %p627_p12 = por %p626_p11, %p625_p10 }
  0xf4   :  { %p628_p13 = pnand %p627_p12, %p623_p9 }
  0xf6   :  { %631 = shalt.err (!%p628_p13)  }
  0xf7   :  { %s632_s16 = scalar_lea.vmem %s1023_s18, 512  ;;  %p637_p1 = scmp.lt.s32.totalorder %s1023_s18, %s819_s14 }
  0xf8   :  { %p633_p0 = scmp.ne.s32.totalorder %s1023_s18, %s632_s16  ;;  %p638_p2 = scmp.lt.s32.totalorder %s846_s9, %s632_s16 }
  0xfa   :  { %p639_p3 = por %p638_p2, %p637_p1 }
  0xfc   :  { %p640_p4 = pnand %p639_p3, %p633_p0 }
  0xfe   :  { %643 = shalt.err (!%p640_p4)  }
  0xff   :  { %164 = dma.hbm_to_vmem [thread:$0]  %s158_s19, 512, %s1023_s18, [#allocation2], %s784_s10, %s784_s10, %s785_s11 }
 0x100   :  { %s359_s25 = sshll.u32 %s170_s26, 4  ;;  %s181_s29 = sshrl.u32 %s1025_s4, 3 }
 0x101   :  { %s172_s17 = scalar_lea.hbm %s1142_s1, %s359_s25  ;;  %s182_s15 = sand.u32 7, %s1025_s4  }
 0x102   :  { %s644_s23 = scalar_lea.hbm %s172_s17, 512  ;;  %p647_p7 = scmp.lt.s32.totalorder %s172_s17, %s1142_s1 }
 0x103   :  { %p645_p5 = scmp.ne.s32.totalorder %s172_s17, %s644_s23  ;;  %p648_p8 = scmp.lt.s32.totalorder %s837_s5, %s644_s23 }
 0x105   :  { %p649_p9 = por %p648_p8, %p647_p7 }
 0x107   :  { %p650_p10 = pnand %p649_p9, %p645_p5 }
 0x109   :  { %653 = shalt.err (!%p650_p10)  }
 0x10a   :  { %s654_s18 = scalar_lea.vmem %s1027_s3, 512  ;;  %p659_p12 = scmp.lt.s32.totalorder %s1027_s3, %s819_s14 }
 0x10b   :  { %p655_p11 = scmp.ne.s32.totalorder %s1027_s3, %s654_s18  ;;  %p660_p13 = scmp.lt.s32.totalorder %s846_s9, %s654_s18 }
 0x10d   :  { %p661_p0 = por %p660_p13, %p659_p12 }
 0x10f   :  { %p662_p1 = pnand %p661_p0, %p655_p11 }
 0x111   :  { %665 = shalt.err (!%p662_p1)  }
 0x112   :  { %178 = dma.hbm_to_vmem [thread:$0]  %s172_s17, 512, %s1027_s3, [#allocation2], %s784_s10, %s784_s10, %s785_s11 }
 0x113   :  { %s361_s4 = sshll.u32 %s181_s29, 8  ;;  %s195_s22 = sshrl.u32 %s1031_s7, 3 }
 0x114   :  { %s184_s24 = sadd.s32 %s361_s4, %s182_s15  ;;  %s196_s13 = sand.u32 7, %s1031_s7  }
 0x115   :  { %s362_s27 = sshll.u32 %s184_s24, 4  ;;  %s364_s21 = sshll.u32 %s195_s22, 8 }
 0x116   :  { %s186_s8 = scalar_lea.hbm %s1142_s1, %s362_s27 }
 0x117   :  { %s666_s30 = scalar_lea.hbm %s186_s8, 512  ;;  %p669_p3 = scmp.lt.s32.totalorder %s186_s8, %s1142_s1 }
 0x118   :  { %p667_p2 = scmp.ne.s32.totalorder %s186_s8, %s666_s30  ;;  %p670_p4 = scmp.lt.s32.totalorder %s837_s5, %s666_s30 }
 0x11a   :  { %p671_p5 = por %p670_p4, %p669_p3 }
 0x11c   :  { %p672_p7 = pnand %p671_p5, %p667_p2 }
 0x11e   :  { %675 = shalt.err (!%p672_p7)  }
 0x11f   :  { %s676_s3 = scalar_lea.vmem %s190_s6, 512  ;;  %p681_p9 = scmp.lt.s32.totalorder %s190_s6, %s819_s14 }
 0x120   :  { %p677_p8 = scmp.ne.s32.totalorder %s190_s6, %s676_s3  ;;  %p682_p10 = scmp.lt.s32.totalorder %s846_s9, %s676_s3 }
 0x122   :  { %p683_p11 = por %p682_p10, %p681_p9 }
 0x124   :  { %p684_p12 = pnand %p683_p11, %p677_p8 }
 0x126   :  { %687 = shalt.err (!%p684_p12)  }
 0x127   :  { %192 = dma.hbm_to_vmem [thread:$0]  %s186_s8, 512, %s190_s6, [#allocation2], %s784_s10, %s784_s10, %s785_s11 }
 0x128   :  { %s198_s7 = sadd.s32 %s364_s21, %s196_s13  ;;  %s796_s28 = smov [#allocation5 + $0x105]  }
 0x129   :  { %s365_s29 = sshll.u32 %s198_s7, 4  ;;  %s203_s0 = sshll.u32 %s796_s28, 4  ;;  %s204_s0 = int_to_ptr.vmem [resolvable:$true] %s203_s0 }
 0x12a   :  { %s200_s23 = scalar_lea.hbm %s1142_s1, %s365_s29 }
 0x12b   :  { %s688_s12 = scalar_lea.hbm %s200_s23, 512  ;;  %p691_p0 = scmp.lt.s32.totalorder %s200_s23, %s1142_s1 }
 0x12c   :  { %p689_p13 = scmp.ne.s32.totalorder %s200_s23, %s688_s12  ;;  %p692_p1 = scmp.lt.s32.totalorder %s837_s5, %s688_s12 }
 0x12e   :  { %p693_p2 = por %p692_p1, %p691_p0 }
 0x130   :  { %p694_p3 = pnand %p693_p2, %p689_p13 }
 0x132   :  { %697 = shalt.err (!%p694_p3)  }
 0x133   :  { %s698_s6 = scalar_lea.vmem %s204_s0, 512  ;;  %p703_p5 = scmp.lt.s32.totalorder %s204_s0, %s819_s14 }
 0x134   :  { %p699_p4 = scmp.ne.s32.totalorder %s204_s0, %s698_s6  ;;  %p704_p7 = scmp.lt.s32.totalorder %s846_s9, %s698_s6 }
 0x136   :  { %p705_p8 = por %p704_p7, %p703_p5 }
 0x138   :  { %p706_p9 = pnand %p705_p8, %p699_p4 }
 0x13a   :  { %709 = shalt.err (!%p706_p9)  }
 0x13b   :  { %206 = dma.hbm_to_vmem [thread:$0]  %s200_s23, 512, %s204_s0, [#allocation2], %s784_s10, %s784_s10, %s785_s11 }
 0x13c   :  { %s366_s4 = sld [smem:[#allocation4 + $0xe]]  ;;  %s797_s22 = smov [#allocation5 + $0x106]  }
 0x13d   :  { %s369_s24 = sld [smem:[#allocation4 + $0xf]]  ;;  %s217_s27 = sshll.u32 %s797_s22, 4  ;;  %s1094_s27 = int_to_ptr.vmem [resolvable:$true] %s217_s27 }
 0x13e   :  { %s798_s13 = smov [#allocation5 + $0x107]  }
 0x13f   :  { %s231_s19 = sshll.u32 %s798_s13, 4  ;;  %s1096_s19 = int_to_ptr.vmem [resolvable:$true] %s231_s19 }
 0x142   :  { %s209_s26 = sshrl.u32 %s366_s4, 3  ;;  %s210_s8 = sand.u32 7, %s366_s4  }
 0x143   :  { %s367_s21 = sshll.u32 %s209_s26, 8  ;;  %s223_s30 = sshrl.u32 %s369_s24, 3 }
 0x144   :  { %s212_s16 = sadd.s32 %s367_s21, %s210_s8  ;;  %s224_s25 = sand.u32 7, %s369_s24  }
 0x145   :  { %s368_s3 = sshll.u32 %s212_s16, 4  ;;  %s370_s7 = sshll.u32 %s223_s30, 8 }
 0x146   :  { %s214_s0 = scalar_lea.hbm %s1142_s1, %s368_s3  ;;  %s226_s17 = sadd.s32 %s370_s7, %s224_s25 }
 0x147   :  { %s710_s15 = scalar_lea.hbm %s214_s0, 512  ;;  %p713_p11 = scmp.lt.s32.totalorder %s214_s0, %s1142_s1 }
 0x148   :  { %p711_p10 = scmp.ne.s32.totalorder %s214_s0, %s710_s15  ;;  %p714_p12 = scmp.lt.s32.totalorder %s837_s5, %s710_s15 }
 0x14a   :  { %p715_p13 = por %p714_p12, %p713_p11 }
 0x14c   :  { %p716_p0 = pnand %p715_p13, %p711_p10 }
 0x14e   :  { %719 = shalt.err (!%p716_p0)  }
 0x14f   :  { %s720_s20 = scalar_lea.vmem %s1094_s27, 512  ;;  %p725_p2 = scmp.lt.s32.totalorder %s1094_s27, %s819_s14 }
 0x150   :  { %p721_p1 = scmp.ne.s32.totalorder %s1094_s27, %s720_s20  ;;  %p726_p3 = scmp.lt.s32.totalorder %s846_s9, %s720_s20 }
 0x152   :  { %p727_p4 = por %p726_p3, %p725_p2 }
 0x154   :  { %p728_p5 = pnand %p727_p4, %p721_p1 }
 0x156   :  { %731 = shalt.err (!%p728_p5)  }
 0x157   :  { %220 = dma.hbm_to_vmem [thread:$0]  %s214_s0, 512, %s1094_s27, [#allocation2], %s784_s10, %s784_s10, %s785_s11 }
 0x158   :  { %s371_s18 = sshll.u32 %s226_s17, 4 }
 0x159   :  { %s228_s24 = scalar_lea.hbm %s1142_s1, %s371_s18 }
 0x15a   :  { %s732_s22 = scalar_lea.hbm %s228_s24, 512  ;;  %p735_p8 = scmp.lt.s32.totalorder %s228_s24, %s1142_s1 }
 0x15b   :  { %p733_p7 = scmp.ne.s32.totalorder %s228_s24, %s732_s22  ;;  %p736_p9 = scmp.lt.s32.totalorder %s837_s5, %s732_s22 }
 0x15d   :  { %p737_p10 = por %p736_p9, %p735_p8 }
 0x15f   :  { %p738_p11 = pnand %p737_p10, %p733_p7 }
 0x161   :  { %741 = shalt.err (!%p738_p11)  }
 0x162   :  { %s742_s27 = scalar_lea.vmem %s1096_s19, 512  ;;  %p747_p13 = scmp.lt.s32.totalorder %s1096_s19, %s819_s14 }
 0x163   :  { %p743_p12 = scmp.ne.s32.totalorder %s1096_s19, %s742_s27  ;;  %p748_p0 = scmp.lt.s32.totalorder %s846_s9, %s742_s27 }
 0x165   :  { %p749_p1 = por %p748_p0, %p747_p13 }
 0x167   :  { %p750_p2 = pnand %p749_p1, %p743_p12 }
 0x169   :  { %753 = shalt.err (!%p750_p2)  }
 0x16a   :  { %234 = dma.hbm_to_vmem [thread:$0]  %s228_s24, 512, %s1096_s19, [#allocation2], %s784_s10, %s784_s10, %s785_s11 }
 0x16b   :  { %776 = dma.done.wait [#allocation2], 8192 }
 0x16c   :  { %777 = vsyncadd [#allocation2], 4294959104  ;;  %p755_p3 = scmp.ne.s32.totalorder %s819_s14, %s846_s9  ;;  %p760_p4 = scmp.lt.s32.totalorder %s846_s9, %s846_s9 }
 0x16e   :  { %p761_p5 = por %p760_p4, %p417_p6 }
 0x170   :  { %p762_p7 = pnand %p761_p5, %p755_p3 }
 0x172   :  { %765 = shalt.err (!%p762_p7)
}
 0x173   :  { %s799_s1 = smov 4096   ;;  %s800_s5 = smov 256  }
 0x174   :  { %250 = dma.vmem_to_hbm [thread:$0]  %s819_s14, 8192, %s1143_s2, [#allocation6], %s799_s1, %s799_s1, %s800_s5  }
 0x175   :  { %778 = dma.done.wait [#allocation6], 8192  }
 0x176   :  { %779 = vsyncadd [#allocation6], 4294959104 }
 0x177   :  { %254 = vsyncpa [#allocation6], 1 }
 0x178   :  { %255 = vsyncmov [#allocation2] }
 0x17b   :  { %s256_s10 = vpop.sfrf %255 }
 0x17c   :  { %p372_p8 = scmp.ne.s32.totalorder %s256_s10, 0 }
 0x17e   :  { %260 = shalt.err (%p372_p8)  }

</bundles_post_ra>
